<compile_context>
chip_gen: v6e
topology: v6e:2x2x1
jax: 0.10.0
libtpu: 0.0.40
codegen_flags: <defaults>
</compile_context>

<pallas_src>
import functools

import jax
import jax.numpy as jnp
from jax.experimental import pallas as pl
from jax.experimental.pallas import tpu as pltpu


# ---------------------------------------------------------------------------
# Pallas kernel
# ---------------------------------------------------------------------------
def _adapter_kernel(
    x_ref,                         # [1, TILE_R, C_in]  bf16 pixel rows
    wc_ref, bc_ref,                # conv (LoRA folded): [C_in, C1], [1, C1]
    wn_ref, bn_ref,                # neck (LoRA folded): [C1, C2],  [1, C2]
    wh_ref, bh_ref,                # head (lane-padded): [C2, Cp],  [1, Cp]
    o_ref,                         # [1, 1, Cp]
    acc_ref,                       # VMEM scratch [1, C1]: per-batch spatial sum
    *,
    inv_hw, c_in,
):
    t = pl.program_id(1)

    @pl.when(t == 0)
    def _init():
        acc_ref[...] = jnp.zeros_like(acc_ref)

    # Widen bf16 stream to f32: keeps elementwise math f32 (v5e-safe).
    x = x_ref[0].astype(jnp.float32)                       # [TILE_R, C_in]

    # Encoder 1x1 conv (per-pixel linear).  K = C_in is tiny, so use C_in
    # unrolled broadcast-FMAs on the VPU instead of a shallow MXU contraction.
    if c_in <= 8:
        y = x[:, 0:1] * wc_ref[0:1, :]
        for c in range(1, c_in):
            y = y + x[:, c:c + 1] * wc_ref[c:c + 1, :]
    else:
        y = jnp.dot(x, wc_ref[...], preferred_element_type=jnp.float32)
    y = jnp.maximum(y + bc_ref[...], 0.0)                  # [TILE_R, C1]

    # Accumulate the spatial sum for this batch element (exact f32 reduce).
    acc_ref[...] += jnp.sum(y, axis=0, keepdims=True)

    @pl.when(t == pl.num_programs(1) - 1)
    def _finalize():
        pooled = acc_ref[...] * inv_hw                     # [1, C1] global mean
        z = jnp.dot(pooled, wn_ref[...], preferred_element_type=jnp.float32)
        z = jnp.maximum(z + bn_ref[...], 0.0)              # [1, C2]
        o = jnp.dot(z, wh_ref[...], preferred_element_type=jnp.float32)
        o = o + bh_ref[...]                                # [1, Cp]
        o_ref[...] = o[None].astype(o_ref.dtype)           # [1, 1, Cp]


def _pick_tile(hw, max_tile=1024):
    """Largest multiple-of-8 divisor of hw not exceeding max_tile."""
    for t in range(min(hw, max_tile), 7, -1):
        if hw % t == 0 and t % 8 == 0:
            return t
    return hw


def echocardio_adapter_forward(x_nchw, params, *, rank=4, lora_alpha=8,
                               tile_rows=None):
    """x_nchw: [B, C, H, W] float32 (PyTorch NCHW convention)."""
    B, C, H, W = x_nchw.shape
    HW = H * W
    scale = float(lora_alpha) / float(rank)
    hi = jax.lax.Precision.HIGHEST

    # Fold LoRA into the base weights (exact at inference, lora_dropout=0).
    wc = params["wc"] + scale * jnp.dot(params["ac"], params["bcl"], precision=hi)
    wn = params["wn"] + scale * jnp.dot(params["an"], params["bnl"], precision=hi)
    bc, bn = params["bc"], params["bn"]

    C1 = wc.shape[1]
    C2 = wn.shape[1]
    C_out = params["wh"].shape[1]
    c_out_pad = ((C_out + 127) // 128) * 128               # lane-dense head out
    wh = jnp.pad(params["wh"], ((0, 0), (0, c_out_pad - C_out)))
    bh = jnp.pad(params["bh"], ((0, 0), (0, c_out_pad - C_out)))

    # NCHW -> NHWC -> [B, HW, C]; stream pixels as bf16 (halves HBM bytes).
    x = jnp.transpose(x_nchw, (0, 2, 3, 1)).reshape(B, HW, C).astype(jnp.bfloat16)

    tile = tile_rows if tile_rows is not None else _pick_tile(HW)
    assert HW % tile == 0, (HW, tile)
    n_tiles = HW // tile

    kernel = functools.partial(_adapter_kernel, inv_hw=1.0 / HW, c_in=C)

    grid_spec = pltpu.PrefetchScalarGridSpec(
        num_scalar_prefetch=0,
        grid=(B, n_tiles),                                  # (parallel, reduce)
        in_specs=[
            pl.BlockSpec((1, tile, C),      lambda b, t: (b, t, 0)),  # x tile
            pl.BlockSpec((C, C1),           lambda b, t: (0, 0)),     # wc_eff
            pl.BlockSpec((1, C1),           lambda b, t: (0, 0)),     # bc
            pl.BlockSpec((C1, C2),          lambda b, t: (0, 0)),     # wn_eff
            pl.BlockSpec((1, C2),           lambda b, t: (0, 0)),     # bn
            pl.BlockSpec((C2, c_out_pad),   lambda b, t: (0, 0)),     # wh (padded)
            pl.BlockSpec((1, c_out_pad),    lambda b, t: (0, 0)),     # bh (padded)
        ],
        out_specs=pl.BlockSpec((1, 1, c_out_pad), lambda b, t: (b, 0, 0)),
        scratch_shapes=[pltpu.VMEM((1, C1), jnp.float32)],
    )

    # Explicit scoped-VMEM budget: double-buffered bf16 x tiles + f32
    # intermediates + weights, with headroom; capped at v7x's 64 MiB physical.
    weight_bytes = (C * C1 + C1 + C1 * C2 + C2 + C2 * c_out_pad + c_out_pad) * 4
    vmem_bytes = (2 * 2 * tile * C * 2          # x double buffer (bf16)
                  + 4 * tile * C1 * 4           # y / FMA temporaries (f32)
                  + 2 * weight_bytes
                  + (2 << 20))                  # headroom
    vmem_bytes = int(min(max(vmem_bytes, 4 << 20), 64 << 20))

    out = pl.pallas_call(
        kernel,
        out_shape=jax.ShapeDtypeStruct((B, 1, c_out_pad), jnp.float32),
        grid_spec=grid_spec,
        compiler_params=pltpu.CompilerParams(
            dimension_semantics=("parallel", "arbitrary"),
            vmem_limit_bytes=vmem_bytes,
        ),
    )(x, wc, bc, wn, bn, wh, bh)

    return out[:, 0, :C_out]


# ---------------------------------------------------------------------------
# Pure-JAX reference (unfolded LoRA, same math) for correctness checking.
# Mirrors the kernel's bf16 input quantization; weights stay f32.
# ---------------------------------------------------------------------------
def reference_forward(x_nchw, params, *, rank=4, lora_alpha=8):
    B, C, H, W = x_nchw.shape
    scale = lora_alpha / rank
    hi = jax.lax.Precision.HIGHEST
    x = jnp.transpose(x_nchw, (0, 2, 3, 1)).reshape(B * H * W, C)
    x = x.astype(jnp.bfloat16).astype(jnp.float32)
    y = (jnp.dot(x, params["wc"], precision=hi)
         + scale * jnp.dot(jnp.dot(x, params["ac"], precision=hi),
                           params["bcl"], precision=hi)
         + params["bc"])
    y = jnp.maximum(y, 0.0).reshape(B, H * W, -1).mean(axis=1)
    z = (jnp.dot(y, params["wn"], precision=hi)
         + scale * jnp.dot(jnp.dot(y, params["an"], precision=hi),
                           params["bnl"], precision=hi)
         + params["bn"])
    z = jnp.maximum(z, 0.0)
    return jnp.dot(z, params["wh"], precision=hi) + params["bh"]


def init_params(key, *, c_in=4, c1=32, c2=64, c_out=10, rank=4):
    ks = jax.random.split(key, 10)
    s = 0.1
    return {
        # encoder 1x1 conv (stored [C_in, C1] = conv weight transposed)
        "wc":  s * jax.random.normal(ks[0], (c_in, c1), jnp.float32),
        "bc":  s * jax.random.normal(ks[1], (1, c1), jnp.float32),
        "ac":  s * jax.random.normal(ks[2], (c_in, rank), jnp.float32),
        "bcl": s * jax.random.normal(ks[3], (rank, c1), jnp.float32),
        # neck linear (stored [C1, C2])
        "wn":  s * jax.random.normal(ks[4], (c1, c2), jnp.float32),
        "bn":  s * jax.random.normal(ks[5], (1, c2), jnp.float32),
        "an":  s * jax.random.normal(ks[6], (c1, rank), jnp.float32),
        "bnl": s * jax.random.normal(ks[7], (rank, c2), jnp.float32),
        # adapter head (stored [C2, C_out])
        "wh":  s * jax.random.normal(ks[8], (c2, c_out), jnp.float32),
        "bh":  s * jax.random.normal(ks[9], (1, c_out), jnp.float32),
    }


if __name__ == "__main__":
    key = jax.random.PRNGKey(0)
    k_x, k_p = jax.random.split(key)

    B, C, H, W = 2, 4, 16, 16
    x = jax.random.normal(k_x, (B, C, H, W), jnp.float32)
    params = init_params(k_p)

    # tile_rows=128 exercises the multi-tile pooled-sum accumulation path
    # (HW=256 -> 2 row tiles per batch element).
    out = echocardio_adapter_forward(x, params, tile_rows=128)
    out = jax.block_until_ready(out)

    ref = reference_forward(x, params)
    assert out.shape == (B, 10), out.shape
    err = float(jnp.max(jnp.abs(out - ref)))
    assert jnp.allclose(out, ref, atol=2e-3, rtol=2e-3), f"max err {err}"
    print("KERNEL_OK")
</pallas_src>

<mosaic_0001>
module attributes {stable_mosaic.version = 11 : i64} {
  func.func @_adapter_kernel(%arg0: i32, %arg1: i32, %arg2: memref<1x128x4xbf16, #tpu.memory_space<vmem>>, %arg3: memref<4x32xf32, #tpu.memory_space<vmem>>, %arg4: memref<1x32xf32, #tpu.memory_space<vmem>>, %arg5: memref<32x64xf32, #tpu.memory_space<vmem>>, %arg6: memref<1x64xf32, #tpu.memory_space<vmem>>, %arg7: memref<64x128xf32, #tpu.memory_space<vmem>>, %arg8: memref<1x128xf32, #tpu.memory_space<vmem>>, %arg9: memref<1x1x128xf32, #tpu.memory_space<vmem>>, %arg10: memref<1x32xf32, #tpu.memory_space<vmem>>) attributes {dimension_semantics = [#tpu.dimension_semantics<parallel>, #tpu.dimension_semantics<arbitrary>], iteration_bounds = array<i64: 2, 2>, scalar_prefetch = 0 : i64, scratch_operands = 1 : i64, tpu.core_type = #tpu.core_type<tc>, window_params = [{transform_indices = @transform_0, window_bounds = array<i64: 1, 128, 4>}, {pipeline_mode = #tpu.pipeline_mode<synchronous>, transform_indices = @transform_1, window_bounds = array<i64: 4, 32>}, {pipeline_mode = #tpu.pipeline_mode<synchronous>, transform_indices = @transform_2, window_bounds = array<i64: 1, 32>}, {pipeline_mode = #tpu.pipeline_mode<synchronous>, transform_indices = @transform_3, window_bounds = array<i64: 32, 64>}, {pipeline_mode = #tpu.pipeline_mode<synchronous>, transform_indices = @transform_4, window_bounds = array<i64: 1, 64>}, {pipeline_mode = #tpu.pipeline_mode<synchronous>, transform_indices = @transform_5, window_bounds = array<i64: 64, 128>}, {pipeline_mode = #tpu.pipeline_mode<synchronous>, transform_indices = @transform_6, window_bounds = array<i64: 1, 128>}, {transform_indices = @transform_7, window_bounds = array<i64: 1, 1, 128>}]} {
    %c0_i32 = arith.constant 0 : i32
    %0 = arith.cmpi eq, %arg1, %c0_i32 : i32
    %1 = arith.extui %0 : i1 to i32
    %c0_i32_0 = arith.constant 0 : i32
    %2 = arith.cmpi ne, %1, %c0_i32_0 : i32
    scf.if %2 {
      %cst_16 = arith.constant 0.000000e+00 : f32
      %42 = vector.broadcast %cst_16 : f32 to vector<1x32xf32>
      %c0_17 = arith.constant 0 : index
      %c0_18 = arith.constant 0 : index
      %43 = vector.load %arg10[%c0_17, %c0_18] : memref<1x32xf32, #tpu.memory_space<vmem>>, vector<1x32xf32>
      tpu.vector_store %arg10[%c0_17, %c0_18], %42 {strides = array<i32>} : memref<1x32xf32, #tpu.memory_space<vmem>>, vector<1x32xf32>,
    } else {
    }
    %c0 = arith.constant 0 : index
    %c0_1 = arith.constant 0 : index
    %c0_2 = arith.constant 0 : index
    %3 = vector.load %arg2[%c0, %c0_1, %c0_2] : memref<1x128x4xbf16, #tpu.memory_space<vmem>>, vector<1x128x4xbf16>
    %4 = vector.shape_cast %3 : vector<1x128x4xbf16> to vector<128x4xbf16>
    %5 = arith.extf %4 : vector<128x4xbf16> to vector<128x4xf32>
    %6 = vector.extract_strided_slice %5 {offsets = [0, 0], sizes = [128, 1], strides = [1, 1]} : vector<128x4xf32> to vector<128x1xf32>
    %c0_3 = arith.constant 0 : index
    %c0_4 = arith.constant 0 : index
    %7 = vector.load %arg3[%c0_3, %c0_4] : memref<4x32xf32, #tpu.memory_space<vmem>>, vector<1x32xf32>
    %8 = vector.broadcast %6 : vector<128x1xf32> to vector<128x32xf32>
    %9 = vector.broadcast %7 : vector<1x32xf32> to vector<128x32xf32>
    %10 = arith.mulf %8, %9 : vector<128x32xf32>
    %11 = vector.extract_strided_slice %5 {offsets = [0, 1], sizes = [128, 1], strides = [1, 1]} : vector<128x4xf32> to vector<128x1xf32>
    %c1 = arith.constant 1 : index
    %c0_5 = arith.constant 0 : index
    %12 = vector.load %arg3[%c1, %c0_5] : memref<4x32xf32, #tpu.memory_space<vmem>>, vector<1x32xf32>
    %13 = vector.broadcast %11 : vector<128x1xf32> to vector<128x32xf32>
    %14 = vector.broadcast %12 : vector<1x32xf32> to vector<128x32xf32>
    %15 = arith.mulf %13, %14 : vector<128x32xf32>
    %16 = arith.addf %10, %15 : vector<128x32xf32>
    %17 = vector.extract_strided_slice %5 {offsets = [0, 2], sizes = [128, 1], strides = [1, 1]} : vector<128x4xf32> to vector<128x1xf32>
    %c2 = arith.constant 2 : index
    %c0_6 = arith.constant 0 : index
    %18 = vector.load %arg3[%c2, %c0_6] : memref<4x32xf32, #tpu.memory_space<vmem>>, vector<1x32xf32>
    %19 = vector.broadcast %17 : vector<128x1xf32> to vector<128x32xf32>
    %20 = vector.broadcast %18 : vector<1x32xf32> to vector<128x32xf32>
    %21 = arith.mulf %19, %20 : vector<128x32xf32>
    %22 = arith.addf %16, %21 : vector<128x32xf32>
    %23 = vector.extract_strided_slice %5 {offsets = [0, 3], sizes = [128, 1], strides = [1, 1]} : vector<128x4xf32> to vector<128x1xf32>
    %c3 = arith.constant 3 : index
    %c0_7 = arith.constant 0 : index
    %24 = vector.load %arg3[%c3, %c0_7] : memref<4x32xf32, #tpu.memory_space<vmem>>, vector<1x32xf32>
    %25 = vector.broadcast %23 : vector<128x1xf32> to vector<128x32xf32>
    %26 = vector.broadcast %24 : vector<1x32xf32> to vector<128x32xf32>
    %27 = arith.mulf %25, %26 : vector<128x32xf32>
    %28 = arith.addf %22, %27 : vector<128x32xf32>
    %c0_8 = arith.constant 0 : index
    %c0_9 = arith.constant 0 : index
    %29 = vector.load %arg4[%c0_8, %c0_9] : memref<1x32xf32, #tpu.memory_space<vmem>>, vector<1x32xf32>
    %30 = vector.broadcast %29 : vector<1x32xf32> to vector<128x32xf32>
    %31 = arith.addf %28, %30 : vector<128x32xf32>
    %cst = arith.constant 0.000000e+00 : f32
    %32 = vector.broadcast %cst : f32 to vector<128x32xf32>
    %33 = arith.maximumf %31, %32 : vector<128x32xf32>
    %c0_10 = arith.constant 0 : index
    %c0_11 = arith.constant 0 : index
    %34 = vector.load %arg10[%c0_10, %c0_11] : memref<1x32xf32, #tpu.memory_space<vmem>>, vector<1x32xf32>
    %cst_12 = arith.constant dense<0.000000e+00> : vector<32xf32>
    %35 = vector.multi_reduction <add>, %33, %cst_12 [0] : vector<128x32xf32> to vector<32xf32>
    %36 = vector.shape_cast %35 : vector<32xf32> to vector<1x32xf32>
    %37 = arith.addf %34, %36 : vector<1x32xf32>
    %c0_13 = arith.constant 0 : index
    %c0_14 = arith.constant 0 : index
    %38 = vector.load %arg10[%c0_13, %c0_14] : memref<1x32xf32, #tpu.memory_space<vmem>>, vector<1x32xf32>
    tpu.vector_store %arg10[%c0_13, %c0_14], %37 {strides = array<i32>} : memref<1x32xf32, #tpu.memory_space<vmem>>, vector<1x32xf32>,
    %c1_i32 = arith.constant 1 : i32
    %39 = arith.cmpi eq, %arg1, %c1_i32 : i32
    %40 = arith.extui %39 : i1 to i32
    %c0_i32_15 = arith.constant 0 : i32
    %41 = arith.cmpi ne, %40, %c0_i32_15 : i32
    scf.if %41 {
      %c0_16 = arith.constant 0 : index
      %c0_17 = arith.constant 0 : index
      %42 = vector.load %arg10[%c0_16, %c0_17] : memref<1x32xf32, #tpu.memory_space<vmem>>, vector<1x32xf32>
      %cst_18 = arith.constant 3.906250e-03 : f32
      %43 = vector.broadcast %cst_18 : f32 to vector<1x32xf32>
      %44 = arith.mulf %42, %43 : vector<1x32xf32>
      %c0_19 = arith.constant 0 : index
      %c0_20 = arith.constant 0 : index
      %45 = vector.load %arg5[%c0_19, %c0_20] : memref<32x64xf32, #tpu.memory_space<vmem>>, vector<32x64xf32>
      %cst_21 = arith.constant dense<0.000000e+00> : vector<1x64xf32>
      %46 = tpu.matmul %44, %45, %cst_21 {dimension_numbers = #tpu.dot_dimension_numbers<[1], [0], [0], [1], [0, 0, 1, 1], [], []>} : vector<1x32xf32>, vector<32x64xf32>, vector<1x64xf32> -> vector<1x64xf32>
      %c0_22 = arith.constant 0 : index
      %c0_23 = arith.constant 0 : index
      %47 = vector.load %arg6[%c0_22, %c0_23] : memref<1x64xf32, #tpu.memory_space<vmem>>, vector<1x64xf32>
      %48 = arith.addf %46, %47 : vector<1x64xf32>
      %cst_24 = arith.constant 0.000000e+00 : f32
      %49 = vector.broadcast %cst_24 : f32 to vector<1x64xf32>
      %50 = arith.maximumf %48, %49 : vector<1x64xf32>
      %c0_25 = arith.constant 0 : index
      %c0_26 = arith.constant 0 : index
      %51 = vector.load %arg7[%c0_25, %c0_26] : memref<64x128xf32, #tpu.memory_space<vmem>>, vector<64x128xf32>
      %cst_27 = arith.constant dense<0.000000e+00> : vector<1x128xf32>
      %52 = tpu.matmul %50, %51, %cst_27 {dimension_numbers = #tpu.dot_dimension_numbers<[1], [0], [0], [1], [0, 0, 1, 1], [], []>} : vector<1x64xf32>, vector<64x128xf32>, vector<1x128xf32> -> vector<1x128xf32>
      %c0_28 = arith.constant 0 : index
      %c0_29 = arith.constant 0 : index
      %53 = vector.load %arg8[%c0_28, %c0_29] : memref<1x128xf32, #tpu.memory_space<vmem>>, vector<1x128xf32>
      %54 = arith.addf %52, %53 : vector<1x128xf32>
      %55 = vector.shape_cast %54 : vector<1x128xf32> to vector<1x1x128xf32>
      %c0_30 = arith.constant 0 : index
      %c0_31 = arith.constant 0 : index
      %c0_32 = arith.constant 0 : index
      %56 = vector.load %arg9[%c0_30, %c0_31, %c0_32] : memref<1x1x128xf32, #tpu.memory_space<vmem>>, vector<1x1x128xf32>
      tpu.vector_store %arg9[%c0_30, %c0_31, %c0_32], %55 {strides = array<i32>} : memref<1x1x128xf32, #tpu.memory_space<vmem>>, vector<1x1x128xf32>,
    } else {
    }
    return
  }
  func.func @transform_0(%arg0: i32, %arg1: i32) -> (i32, i32, i32) {
    %c0_i32 = arith.constant 0 : i32
    %c0_i32_0 = arith.constant 0 : i32
    return %arg0, %arg1, %c0_i32 : i32, i32, i32
  }
  func.func @transform_1(%arg0: i32, %arg1: i32) -> (i32, i32) {
    %c0_i32 = arith.constant 0 : i32
    %c0_i32_0 = arith.constant 0 : i32
    %c0_i32_1 = arith.constant 0 : i32
    return %c0_i32, %c0_i32_0 : i32, i32
  }
  func.func @transform_2(%arg0: i32, %arg1: i32) -> (i32, i32) {
    %c0_i32 = arith.constant 0 : i32
    %c0_i32_0 = arith.constant 0 : i32
    %c0_i32_1 = arith.constant 0 : i32
    return %c0_i32, %c0_i32_0 : i32, i32
  }
  func.func @transform_3(%arg0: i32, %arg1: i32) -> (i32, i32) {
    %c0_i32 = arith.constant 0 : i32
    %c0_i32_0 = arith.constant 0 : i32
    %c0_i32_1 = arith.constant 0 : i32
    return %c0_i32, %c0_i32_0 : i32, i32
  }
  func.func @transform_4(%arg0: i32, %arg1: i32) -> (i32, i32) {
    %c0_i32 = arith.constant 0 : i32
    %c0_i32_0 = arith.constant 0 : i32
    %c0_i32_1 = arith.constant 0 : i32
    return %c0_i32, %c0_i32_0 : i32, i32
  }
  func.func @transform_5(%arg0: i32, %arg1: i32) -> (i32, i32) {
    %c0_i32 = arith.constant 0 : i32
    %c0_i32_0 = arith.constant 0 : i32
    %c0_i32_1 = arith.constant 0 : i32
    return %c0_i32, %c0_i32_0 : i32, i32
  }
  func.func @transform_6(%arg0: i32, %arg1: i32) -> (i32, i32) {
    %c0_i32 = arith.constant 0 : i32
    %c0_i32_0 = arith.constant 0 : i32
    %c0_i32_1 = arith.constant 0 : i32
    return %c0_i32, %c0_i32_0 : i32, i32
  }
  func.func @transform_7(%arg0: i32, %arg1: i32) -> (i32, i32, i32) {
    %c0_i32 = arith.constant 0 : i32
    %c0_i32_0 = arith.constant 0 : i32
    %c0_i32_1 = arith.constant 0 : i32
    return %arg0, %c0_i32, %c0_i32_0 : i32, i32, i32
  }
}

</mosaic_0001>

<bundles_post_ra>
// kernel: tpu_custom_call.1
= control target key start
LH: loop header
LB: loop body
LE: loop exit
PB: predicated region body
PF: predicated region fallthrough
CT: control target
= control target key end

     0   :  { %s1879_s0 = inlined_call_operand.vmem [shape: bf16[2,256,4], index: 0, kind: input, shape index: {}]   ;;  %s1880_s1 = inlined_call_operand.vmem [shape: f32[4,32], index: 1, kind: input, shape index: {}]   ;;  %s1881_s2 = inlined_call_operand.vmem [shape: f32[1,32], index: 2, kind: input, shape index: {}]   ;;  %s1882_s3 = inlined_call_operand.vmem [shape: f32[32,64], index: 3, kind: input, shape index: {}]   ;;  %s1883_s4 = inlined_call_operand.vmem [shape: f32[1,64], index: 4, kind: input, shape index: {}]   ;;  %s1884_s5 = inlined_call_operand.vmem [shape: f32[64,128], index: 5, kind: input, shape index: {}]   ;;  %s1885_s6 = inlined_call_operand.vmem [shape: f32[1,128], index: 6, kind: input, shape index: {}]   ;;  %s1886_s7 = inlined_call_operand.hbm [shape: f32[2,1,128], index: 7, kind: output, shape index: {}]  }
   0x1   :  { %1887 = sst [smem:[#allocation6_spill]] %s1879_s0 }
   0x2   :  { %12 = vsyncpa [#allocation4], 0 }
   0x3   :  { %14 = vsyncpa [#allocation4 + $0x1], 0  ;;  %s1567_s24 = smov 0   ;;  %s1569_s25 = smov 0  }
   0x4   :  { %s1571_s26 = smov 0   ;;  %s1573_s27 = smov 0  }
   0x5   :  { %s1575_s28 = smov 0   ;;  %s1577_s29 = smov 0  }
   0x6   :  { %s1579_s30 = smov 0   ;;  %s1581_s8 = smov 0  }
   0x7 LB: > { %s1081_s9 = sadd.s32 4294967295, %s1517_s8   ;;  %s1082_s10 = sadd.s32 4294967294, %s1517_s8   ;;  %s1517_s8 = sphi %s1581_s8, %s20_s8   ;;  %s1513_s30 = sphi %s1579_s30, %s1897_s30   ;;  %s1509_s29 = sphi %s1577_s29, %s1896_s29   ;;  %s1505_s28 = sphi %s1575_s28, %s1895_s28   ;;  %s1501_s27 = sphi %s1573_s27, %s1894_s27   ;;  %s1497_s26 = sphi %s1571_s26, %s1893_s26   ;;  %s1493_s25 = sphi %s1569_s25, %s1892_s25   ;;  %s1489_s24 = sphi %s1567_s24, %s1891_s24  }
   0x8   : > { %s29_s11 = sadd.s32 1, %s1509_s29  ;;  %s32_s12 = sadd.s32 1, %s1513_s30 }
   0x9   : > { %p30_p0 = scmp.ge.s32.totalorder %s29_s11, 2  ;;  %p203_p1 = scmp.ne.s32.totalorder %s1497_s26, %s1493_s25 }
   0xa   : > { %p204_p2 = scmp.eq.s32.totalorder %s1081_s9, 3  ;;  %p209_p4 = scmp.ne.s32.totalorder %s1493_s25, %s1489_s24 }
   0xb   : > { %s1899_s11 = smov (%p30_p0, %s29_s11), 0  ;;  %s1901_s12 = smov (!%p30_p0, %s32_s12), %s1513_s30 }
   0xc   : > { %p1616_p3 = por %p204_p2, %p203_p1  ;;  %p34_p5 = scmp.ge.s32.totalorder %s1901_s12, 2 }
   0xd   : > { %p210_p6 = scmp.eq.s32.totalorder %s1082_s10, 3  ;;  %p1085_p7 = scmp.ge.s32.totalorder %s1517_s8, 1 }
   0xe   : > { %p259_p8 = scmp.lt.s32.totalorder %s1517_s8, 5  ;;  %s1903_s12 = smov (%p34_p5, %s1901_s12), 0 }
   0xf   : > { %p1626_p9 = por %p210_p6, %p209_p4  ;;  %s190_s15 = ssub.s32 %s1513_s30, %s1903_s12 }
  0x10   : > { %p260_p10 = pnand %p1085_p7, %p259_p8  ;;  %s193_s16 = sadd.s32 1, %s1497_s26 }
  0x11   : > { %p191_p11 = scmp.eq.s32.totalorder %s190_s15, 0  ;;  %s292_s18 = sand.u32 (!%p260_p10), 1, %s1493_s25  }
  0x12   : > { %263 = sbr.rel (%p260_p10) target bundleno = 687 (0x2af), region = 48  ;;  %s1086_s19 = sshll.u32 (!%p260_p10), %s1501_s27, 4 }
  0x13   : > { %s1634_s17 = scalar_select %p191_p11, %s1497_s26, %s193_s16  }
  0x14   : > { %p295_p12 = scmp.lt.s32.totalorder (!%p260_p10), %s1505_s28, 1  ;;  %p297_p13 = scmp.lt.s32.totalorder (!%p260_p10), %s1086_s19, 31 }
  0x15   : > { %s1890_s0 = sld [smem:[#allocation6_spill]] (!%p260_p10)  ;;  %s1647_s16 = scalar_lea.vmem (!%p260_p10), [#allocation3], %s292_s18 }
  0x16   : > { %p1089_p0 = scmp.ne.s32.totalorder (!%p260_p10), %s1501_s27, 0 }
  0x17   : > { %s296_s20 = scalar_select %p295_p12, %s1505_s28, 1 }
  0x18   : > { %s1905_s19 = smov (!%p297_p13, %s1086_s19), 31  ;;  %307 = sbr.rel (%p1089_p0) target bundleno = 31 (0x1f), region = 52 }
  0x19   : > { %s1087_s21 = sshll.u32 %s296_s20, 5 }
  0x1a   : > { %s300_s22 = sadd.s32 %s1087_s21, %s1905_s19 }
  0x1b   : > { %s1088_s23 = sshll.u32 %s300_s22, 2 }
  0x1c   : > { %s1643_s15 = scalar_lea.vmem %s1890_s0, %s1088_s23 }
  0x1d   : > { %vm308_vm0 = vcmask 253952   ;;  %v1519_v0 = vmov 0.0  }
  0x1e   : > { %309 = vst.msk [vmem:[#allocation2] sm:$0x1] %vm308_vm0, %v1519_v0 }
  0x1f PF: > { %v1134_v1 = vld [vmem:[%s1643_s15 + $0x10] sm:$0xff]   ;;  %v1102_v2 = vld [vmem:[%s1643_s15] sm:$0xff]   ;;  %v1135_v3 = vld [vmem:[%s1643_s15 + $0x18] sm:$0xff]   ;;  %v1520_v4 = vmov 0   ;;  %v1521_v34 = vmov 1   ;;  %v1522_v35 = vmov 2  }
  0x20   : > { %1273 = vset.pattern.permute.xlu1 %v1520_v4  ;;  %1262 = vset.pattern.permute.xlu0 %v1520_v4  ;;  %v1111_v5 = vunpack.c.l.bf16 %v1134_v1  ;;  %v1112_v6 = vunpack.c.h.bf16 %v1134_v1  ;;  %v1103_v7 = vunpack.c.l.bf16 %v1102_v2  ;;  %v1104_v8 = vunpack.c.h.bf16 %v1102_v2  ;;  %v1133_v9 = vld [vmem:[%s1643_s15 + $0x8] sm:$0xff]   ;;  %v1136_v15 = vld [vmem:[%s1643_s15 + $0x20] sm:$0xff]   ;;  %v1139_v24 = vld [vmem:[%s1643_s15 + $0x38] sm:$0xff]   ;;  %p1095_p1 = scmp.ne.s32.totalorder %s1501_s27, 1 }
  0x21   : > { %v1137_v10 = vld [vmem:[%s1643_s15 + $0x28] sm:$0xff]   ;;  %v1115_v11 = vunpack.c.l.bf16 %v1135_v3  ;;  %v1116_v12 = vunpack.c.h.bf16 %v1135_v3  ;;  %v1107_v13 = vunpack.c.l.bf16 %v1133_v9  ;;  %v1108_v14 = vunpack.c.h.bf16 %v1133_v9  ;;  %v1138_v25 = vld [vmem:[%s1643_s15 + $0x30] sm:$0xff]   ;;  %v1090_v46 = vld [vmem:[%s1880_s1] ss:$0 sm:$0xff] }
  0x22   : > { %v1274_v16 = vpack.i.bf16 %v1112_v6, %v1111_v5  ;;  %v1263_v17 = vpack.i.bf16 %v1104_v8, %v1103_v7  ;;  %v1123_v18 = vunpack.c.l.bf16 %v1137_v10  ;;  %v1124_v19 = vunpack.c.h.bf16 %v1137_v10 }
  0x23   : > { %v1279_v20 = vpack.i.bf16 %v1116_v12, %v1115_v11  ;;  %v1268_v21 = vpack.i.bf16 %v1108_v14, %v1107_v13  ;;  %v1119_v22 = vunpack.c.l.bf16 %v1136_v15  ;;  %v1120_v23 = vunpack.c.h.bf16 %v1136_v15  ;;  %v1091_v12 = vld [vmem:[%s1880_s1 + $0x1] ss:$0 sm:$0xff] }
  0x24   : > { %1275 = vperm.xlu1 %1273, %v1274_v16   ;;  %1264 = vperm.xlu0 %1262, %v1263_v17   ;;  %v1289_v26 = vpack.i.bf16 %v1124_v19, %v1123_v18  ;;  %v1131_v27 = vunpack.c.l.bf16 %v1139_v24  ;;  %v1132_v29 = vunpack.c.h.bf16 %v1139_v24  ;;  %v1127_v30 = vunpack.c.l.bf16 %v1138_v25 }
  0x25   : > { %v1284_v28 = vpack.i.bf16 %v1120_v23, %v1119_v22  ;;  %v1128_v31 = vunpack.c.h.bf16 %v1138_v25  ;;  %v1523_v36 = vmov 3   ;;  %vm786_vm1 = vcmask 261120  }
  0x26   : > { %v1299_v32 = vpack.i.bf16 %v1132_v29, %v1131_v27  ;;  %vm825_vm2 = vcmask 253952  }
  0x27   : > { %v1294_v33 = vpack.i.bf16 %v1128_v31, %v1127_v30 }
  0x28   : > { %1280 = vperm.xlu1 %1273, %v1279_v20   ;;  %1269 = vperm.xlu0 %1262, %v1268_v21  }
  0x2c   : > { %1290 = vperm.xlu1 %1273, %v1289_v26   ;;  %1285 = vperm.xlu0 %1262, %v1284_v28  }
  0x30   : > { %1300 = vperm.xlu1 %1273, %v1299_v32   ;;  %1295 = vperm.xlu0 %1262, %v1294_v33  }
  0x34   : > { %1310 = vset.pattern.permute.xlu1 %v1521_v34  ;;  %1304 = vset.pattern.permute.xlu0 %v1521_v34 }
  0x35   : > { %1312 = vperm.xlu1 %1310, %v1268_v21   ;;  %1306 = vperm.xlu0 %1304, %v1263_v17  }
  0x39   : > { %1317 = vperm.xlu1 %1310, %v1274_v16   ;;  %1322 = vperm.xlu0 %1304, %v1279_v20  }
  0x3d   : > { %1327 = vperm.xlu1 %1310, %v1284_v28   ;;  %1332 = vperm.xlu0 %1304, %v1289_v26  }
  0x41   : > { %1337 = vperm.xlu1 %1310, %v1294_v33   ;;  %1342 = vperm.xlu0 %1304, %v1299_v32  }
  0x45   : > { %1346 = vset.pattern.permute.xlu1 %v1522_v35  ;;  %1352 = vset.pattern.permute.xlu0 %v1522_v35 }
  0x46   : > { %1348 = vperm.xlu1 %1346, %v1263_v17   ;;  %1354 = vperm.xlu0 %1352, %v1268_v21  }
  0x4a   : > { %1358 = vset.pattern.permute.xlu1 %v1523_v36  ;;  %1370 = vperm.xlu0 %1352, %v1274_v16  }
  0x4b   : > { %1360 = vperm.xlu1 %1358, %v1263_v17  }
  0x4e   : > { %1380 = vperm.xlu0 %1352, %v1279_v20  }
  0x4f   : > { %1365 = vperm.xlu1 %1358, %v1268_v21  }
  0x52   : > { %1390 = vperm.xlu0 %1352, %v1284_v28  }
  0x53   : > { %1375 = vperm.xlu1 %1358, %v1274_v16  }
  0x56   : > { %1400 = vperm.xlu0 %1352, %v1289_v26  }
  0x57   : > { %1385 = vperm.xlu1 %1358, %v1279_v20  }
  0x5a   : > { %1410 = vperm.xlu0 %1352, %v1294_v33  }
  0x5b   : > { %1395 = vperm.xlu1 %1358, %v1284_v28  }
  0x5e   : > { %1420 = vperm.xlu0 %1352, %v1299_v32  }
  0x5f   : > { %1405 = vperm.xlu1 %1358, %v1289_v26  }
  0x62   : > { %1424 = vset.pattern.permute.xlu0 %v1523_v36 }
  0x63   : > { %1415 = vperm.xlu1 %1358, %v1294_v33   ;;  %707 = vperm.xlu0 %1424, %v1132_v29  }
  0x67   : > { %703 = vperm.xlu1 %1358, %v1131_v27  }
  0x9f   : > { %v1276_v37 = vpop.permute.xlu1 %1275  ;;  %v1265_v38 = vpop.permute.xlu0 %1264 }
  0xa0   : > { %v1278_v45 = vunpack.i.h.bf16 %v1276_v37  ;;  %v1277_v47 = vunpack.i.l.bf16 %v1276_v37  ;;  %v1267_v50 = vunpack.i.h.bf16 %v1265_v38  ;;  %v1266_v51 = vunpack.i.l.bf16 %v1265_v38 }
  0xa2   : > { %v432_v54 = vmul.f32 %v1278_v45, %v1090_v46  ;;  %v431_v55 = vmul.f32 %v1277_v47, %v1090_v46  ;;  %v428_v61 = vmul.f32 %v1267_v50, %v1090_v46  ;;  %v427_v62 = vmul.f32 %v1266_v51, %v1090_v46 }
  0xa3   : > { %v1281_v39 = vpop.permute.xlu1 %1280  ;;  %v1270_v40 = vpop.permute.xlu0 %1269 }
  0xa4   : > { %v1283_v52 = vunpack.i.h.bf16 %v1281_v39  ;;  %v1282_v53 = vunpack.i.l.bf16 %v1281_v39  ;;  %v1272_v56 = vunpack.i.h.bf16 %v1270_v40  ;;  %v1271_v57 = vunpack.i.l.bf16 %v1270_v40 }
  0xa6   : > { %v1661_v63 = vmul.f32 %v1283_v52, %v1090_v46  ;;  %v1663_v0 = vmul.f32 %v1282_v53, %v1090_v46  ;;  %v430_v9 = vmul.f32 %v1272_v56, %v1090_v46  ;;  %v429_v10 = vmul.f32 %v1271_v57, %v1090_v46 }
  0xa7   : > { %v1291_v41 = vpop.permute.xlu1 %1290  ;;  %v1286_v42 = vpop.permute.xlu0 %1285 }
  0xa8   : > { %v1293_v58 = vunpack.i.h.bf16 %v1291_v41  ;;  %v1292_v1 = vunpack.i.l.bf16 %v1291_v41  ;;  %v1288_v2 = vunpack.i.h.bf16 %v1286_v42  ;;  %v1287_v3 = vunpack.i.l.bf16 %v1286_v42 }
  0xaa   : > { %v1665_v11 = vmul.f32 %v1293_v58, %v1090_v46  ;;  %v437_v20 = vmul.f32 %v1292_v1, %v1090_v46  ;;  %v436_v21 = vmul.f32 %v1288_v2, %v1090_v46  ;;  %v435_v22 = vmul.f32 %v1287_v3, %v1090_v46 }
  0xab   : > { %v1301_v43 = vpop.permute.xlu1 %1300  ;;  %v1296_v44 = vpop.permute.xlu0 %1295 }
  0xac   : > { %v1303_v4 = vunpack.i.h.bf16 %v1301_v43  ;;  %v1302_v5 = vunpack.i.l.bf16 %v1301_v43  ;;  %v1298_v16 = vunpack.i.h.bf16 %v1296_v44  ;;  %v1297_v17 = vunpack.i.l.bf16 %v1296_v44 }
  0xae   : > { %v1670_v23 = vmul.f32 %v1303_v4, %v1090_v46  ;;  %v1672_v24 = vmul.f32 %v1302_v5, %v1090_v46  ;;  %v440_v34 = vmul.f32 %v1298_v16, %v1090_v46  ;;  %v439_v35 = vmul.f32 %v1297_v17, %v1090_v46 }
  0xb0   : > { %v1313_v48 = vpop.permute.xlu1 %1312  ;;  %v1307_v49 = vpop.permute.xlu0 %1306 }
  0xb1   : > { %v1315_v6 = vunpack.i.h.bf16 %v1313_v48  ;;  %v1314_v7 = vunpack.i.l.bf16 %v1313_v48  ;;  %v1308_v8 = vunpack.i.l.bf16 %v1307_v49  ;;  %v1309_v13 = vunpack.i.h.bf16 %v1307_v49 }
  0xb3   : > { %v515_v25 = vmul.f32 %v1315_v6, %v1091_v12  ;;  %v514_v26 = vmul.f32 %v1314_v7, %v1091_v12  ;;  %v512_v27 = vmul.f32 %v1308_v8, %v1091_v12  ;;  %v513_v28 = vmul.f32 %v1309_v13, %v1091_v12 }
  0xb4   : > { %v1318_v59 = vpop.permute.xlu1 %1317  ;;  %v1323_v60 = vpop.permute.xlu0 %1322 }
  0xb5   : > { %v1320_v18 = vunpack.i.h.bf16 %v1318_v59  ;;  %v1319_v19 = vunpack.i.l.bf16 %v1318_v59  ;;  %v1325_v29 = vunpack.i.h.bf16 %v1323_v60  ;;  %v1324_v30 = vunpack.i.l.bf16 %v1323_v60 }
  0xb6   : > { %v530_v42 = vadd.f32 %v514_v26, %v429_v10  ;;  %v531_v43 = vadd.f32 %v515_v25, %v430_v9  ;;  %v528_v44 = vadd.f32 %v512_v27, %v427_v62  ;;  %v529_v47 = vadd.f32 %v513_v28, %v428_v61  ;;  %v1679_v62 = vld [vmem:[%s1880_s1 + $0x2] ss:$0 sm:$0xff] }
  0xb7   : > { %v517_v36 = vmul.f32 %v1320_v18, %v1091_v12  ;;  %v516_v37 = vmul.f32 %v1319_v19, %v1091_v12  ;;  %v519_v48 = vmul.f32 %v1325_v29, %v1091_v12  ;;  %v518_v49 = vmul.f32 %v1324_v30, %v1091_v12 }
  0xb8   : > { %v1328_v14 = vpop.permute.xlu1 %1327  ;;  %v1333_v15 = vpop.permute.xlu0 %1332 }
  0xb9   : > { %v1329_v31 = vunpack.i.l.bf16 %v1328_v14  ;;  %v1330_v38 = vunpack.i.h.bf16 %v1328_v14  ;;  %v1335_v39 = vunpack.i.h.bf16 %v1333_v15  ;;  %v1334_v40 = vunpack.i.l.bf16 %v1333_v15 }
  0xba   : > { %v533_v51 = vadd.f32 %v517_v36, %v432_v54  ;;  %v1674_v52 = vadd.f32 %v516_v37, %v431_v55  ;;  %v535_v54 = vadd.f32 %v519_v48, %v1661_v63  ;;  %v534_v55 = vadd.f32 %v518_v49, %v1663_v0  ;;  %v1718_v36 = vld [vmem:[%s1881_s2] ss:$0 sm:$0xff] }
  0xbb   : > { %v520_v50 = vmul.f32 %v1329_v31, %v1091_v12  ;;  %v521_v58 = vmul.f32 %v1330_v38, %v1091_v12  ;;  %v523_v59 = vmul.f32 %v1335_v39, %v1091_v12  ;;  %v522_v60 = vmul.f32 %v1334_v40, %v1091_v12 }
  0xbc   : > { %v1338_v32 = vpop.permute.xlu1 %1337  ;;  %v1343_v33 = vpop.permute.xlu0 %1342 }
  0xbd   : > { %v1340_v41 = vunpack.i.h.bf16 %v1338_v32  ;;  %v1339_v45 = vunpack.i.l.bf16 %v1338_v32  ;;  %v1345_v53 = vunpack.i.h.bf16 %v1343_v33  ;;  %v1344_v56 = vunpack.i.l.bf16 %v1343_v33 }
  0xbe   : > { %v1683_v5 = vadd.f32 %v520_v50, %v435_v22  ;;  %v1687_v14 = vadd.f32 %v521_v58, %v436_v21  ;;  %v1691_v63 = vadd.f32 %v523_v59, %v1665_v11  ;;  %v1693_v0 = vadd.f32 %v522_v60, %v437_v20  ;;  %v1702_v22 = vld [vmem:[%s1880_s1 + $0x3] ss:$0 sm:$0xff] }
  0xbf   : > { %v525_v1 = vmul.f32 %v1340_v41, %v1091_v12  ;;  %v524_v61 = vmul.f32 %v1339_v45, %v1091_v12  ;;  %v527_v7 = vmul.f32 %v1345_v53, %v1091_v12  ;;  %v526_v8 = vmul.f32 %v1344_v56, %v1091_v12 }
  0xc1   : > { %v1349_v46 = vpop.permute.xlu1 %1348  ;;  %v1355_v57 = vpop.permute.xlu0 %1354  ;;  %v1695_v19 = vadd.f32 %v524_v61, %v439_v35  ;;  %v1697_v12 = vadd.f32 %v525_v1, %v440_v34  ;;  %v1707_v11 = vadd.f32 %v527_v7, %v1670_v23  ;;  %v1710_v20 = vadd.f32 %v526_v8, %v1672_v24 }
  0xc2   : > { %v1351_v2 = vunpack.i.h.bf16 %v1349_v46  ;;  %v1350_v3 = vunpack.i.l.bf16 %v1349_v46  ;;  %v1356_v4 = vunpack.i.l.bf16 %v1355_v57  ;;  %v1357_v6 = vunpack.i.h.bf16 %v1355_v57 }
  0xc4   : > { %v614_v9 = vmul.f32 %v1351_v2, %v1679_v62  ;;  %v613_v10 = vmul.f32 %v1350_v3, %v1679_v62  ;;  %v615_v15 = vmul.f32 %v1356_v4, %v1679_v62  ;;  %v616_v21 = vmul.f32 %v1357_v6, %v1679_v62 }
  0xc5   : > { %v1371_v13 = vpop.permute.xlu0 %1370 }
  0xc6   : > { %v1373_v16 = vunpack.i.h.bf16 %v1371_v13  ;;  %v1372_v17 = vunpack.i.l.bf16 %v1371_v13  ;;  %v1361_v18 = vpop.permute.xlu1 %1360  ;;  %v629_v28 = vadd.f32 %v613_v10, %v528_v44  ;;  %v630_v29 = vadd.f32 %v614_v9, %v529_v47 }
  0xc7   : > { %v1363_v26 = vunpack.i.h.bf16 %v1361_v18  ;;  %v1362_v27 = vunpack.i.l.bf16 %v1361_v18  ;;  %v631_v31 = vadd.f32 %v615_v15, %v530_v42  ;;  %v632_v39 = vadd.f32 %v616_v21, %v531_v43 }
  0xc8   : > { %v618_v25 = vmul.f32 %v1373_v16, %v1679_v62  ;;  %v617_v32 = vmul.f32 %v1372_v17, %v1679_v62 }
  0xc9   : > { %v1381_v30 = vpop.permute.xlu0 %1380  ;;  %v715_v33 = vmul.f32 %v1363_v26, %v1702_v22  ;;  %v714_v34 = vmul.f32 %v1362_v27, %v1702_v22 }
  0xca   : > { %v1366_v35 = vpop.permute.xlu1 %1365  ;;  %v1383_v23 = vunpack.i.h.bf16 %v1381_v30  ;;  %v1382_v37 = vunpack.i.l.bf16 %v1381_v30  ;;  %v634_v40 = vadd.f32 %v618_v25, %v533_v51  ;;  %v633_v43 = vadd.f32 %v617_v32, %v1674_v52 }
  0xcb   : > { %v1368_v24 = vunpack.i.h.bf16 %v1366_v35  ;;  %v1367_v38 = vunpack.i.l.bf16 %v1366_v35  ;;  %v730_v41 = vadd.f32 %v714_v34, %v629_v28  ;;  %v731_v42 = vadd.f32 %v715_v33, %v630_v29 }
  0xcc   : > { %v620_v44 = vmul.f32 %v1383_v23, %v1679_v62  ;;  %v619_v45 = vmul.f32 %v1382_v37, %v1679_v62 }
  0xcd   : > { %v717_v47 = vmul.f32 %v1368_v24, %v1702_v22  ;;  %v716_v48 = vmul.f32 %v1367_v38, %v1702_v22  ;;  %v1391_v49 = vpop.permute.xlu0 %1390  ;;  %v753_v50 = vadd.f32 %v1718_v36, %v730_v41  ;;  %v754_v53 = vadd.f32 %v1718_v36, %v731_v42 }
  0xce   : > { %v1393_v56 = vunpack.i.h.bf16 %v1391_v49  ;;  %v1392_v46 = vunpack.i.l.bf16 %v1391_v49  ;;  %v1376_v57 = vpop.permute.xlu1 %1375  ;;  %v635_v51 = vadd.f32 %v619_v45, %v534_v55  ;;  %v636_v61 = vadd.f32 %v620_v44, %v535_v54 }
  0xcf   : > { %v732_v58 = vadd.f32 %v716_v48, %v631_v31  ;;  %v733_v59 = vadd.f32 %v717_v47, %v632_v39  ;;  %v769_v60 = vmax.f32 %v753_v50, 0.0  ;;  %v770_v1 = vmax.f32 %v754_v53, 0.0 }
  0xd0   : > { %v621_v2 = vmul.f32 %v1392_v46, %v1679_v62  ;;  %v1378_v6 = vunpack.i.h.bf16 %v1376_v57  ;;  %v1377_v7 = vunpack.i.l.bf16 %v1376_v57  ;;  %v622_v52 = vmul.f32 %v1393_v56, %v1679_v62 }
  0xd1   : > { %v755_v3 = vadd.f32 %v1718_v36, %v732_v58  ;;  %v756_v4 = vadd.f32 %v1718_v36, %v733_v59  ;;  %v1401_v8 = vpop.permute.xlu0 %1400  ;;  %v787_v9 = vsel %vm786_vm1, %v769_v60, 0.0  ;;  %v788_v10 = vsel %vm786_vm1, %v770_v1, 0.0 }
  0xd2   : > { %v637_v55 = vadd.f32 %v621_v2, %v1683_v5  ;;  %v1386_v13 = vpop.permute.xlu1 %1385  ;;  %v789_v15 = vadd.f32 %v788_v10, %v787_v9  ;;  %v719_v17 = vmul.f32 %v1378_v6, %v1702_v22  ;;  %v718_v18 = vmul.f32 %v1377_v7, %v1702_v22 }
  0xd3   : > { %v771_v54 = vmax.f32 %v755_v3, 0.0  ;;  %v772_v16 = vmax.f32 %v756_v4, 0.0  ;;  %v1403_v21 = vunpack.i.h.bf16 %v1401_v8  ;;  %v1402_v25 = vunpack.i.l.bf16 %v1401_v8 }
  0xd4   : > { %v1388_v26 = vunpack.i.h.bf16 %v1386_v13  ;;  %v735_v29 = vadd.f32 %v719_v17, %v634_v40  ;;  %v1387_v30 = vunpack.i.l.bf16 %v1386_v13  ;;  %v734_v5 = vadd.f32 %v718_v18, %v633_v43 }
  0xd5   : > { %v790_v27 = vsel %vm786_vm1, %v771_v54, 0.0  ;;  %v792_v28 = vsel %vm786_vm1, %v772_v16, 0.0  ;;  %v1411_v31 = vpop.permute.xlu0 %1410  ;;  %v624_v33 = vmul.f32 %v1403_v21, %v1679_v62  ;;  %v623_v34 = vmul.f32 %v1402_v25, %v1679_v62 }
  0xd6   : > { %v791_v32 = vadd.f32 %v790_v27, %v789_v15  ;;  %v1396_v35 = vpop.permute.xlu1 %1395  ;;  %v758_v23 = vadd.f32 %v1718_v36, %v735_v29  ;;  %v721_v37 = vmul.f32 %v1388_v26, %v1702_v22  ;;  %v720_v24 = vmul.f32 %v1387_v30, %v1702_v22 }
  0xd7   : > { %v1413_v38 = vunpack.i.h.bf16 %v1411_v31  ;;  %v638_v41 = vadd.f32 %v622_v52, %v1687_v14  ;;  %v757_v40 = vadd.f32 %v1718_v36, %v734_v5  ;;  %v639_v42 = vadd.f32 %v623_v34, %v1693_v0 }
  0xd8   : > { %v793_v39 = vadd.f32 %v792_v28, %v791_v32  ;;  %v774_v44 = vmax.f32 %v758_v23, 0.0  ;;  %v736_v45 = vadd.f32 %v720_v24, %v635_v51  ;;  %v737_v47 = vadd.f32 %v721_v37, %v636_v61 }
  0xd9   : > { %v626_v48 = vmul.f32 %v1413_v38, %v1679_v62  ;;  %v773_v49 = vmax.f32 %v757_v40, 0.0  ;;  %v1412_v50 = vunpack.i.l.bf16 %v1411_v31  ;;  %v1398_v53 = vunpack.i.h.bf16 %v1396_v35  ;;  %v1421_v46 = vpop.permute.xlu0 %1420 }
  0xda   : > { %v1397_v56 = vunpack.i.l.bf16 %v1396_v35  ;;  %v1406_v57 = vpop.permute.xlu1 %1405  ;;  %v796_v43 = vsel %vm786_vm1, %v774_v44, 0.0  ;;  %v640_v58 = vadd.f32 %v624_v33, %v1691_v63  ;;  %v759_v14 = vadd.f32 %v1718_v36, %v736_v45 }
  0xdb   : > { %v760_v59 = vadd.f32 %v1718_v36, %v737_v47  ;;  %v794_v0 = vsel %vm786_vm1, %v773_v49, 0.0  ;;  %v625_v51 = vmul.f32 %v1412_v50, %v1679_v62  ;;  %v723_v60 = vmul.f32 %v1398_v53, %v1702_v22 }
  0xdc   : > { %v722_v1 = vmul.f32 %v1397_v56, %v1702_v22  ;;  %v795_v61 = vadd.f32 %v794_v0, %v793_v39  ;;  %v775_v2 = vmax.f32 %v759_v14, 0.0  ;;  %v1423_v4 = vunpack.i.h.bf16 %v1421_v46 }
  0xdd   : > { %v776_v3 = vmax.f32 %v760_v59, 0.0  ;;  %v642_v6 = vadd.f32 %v626_v48, %v1697_v12  ;;  %v739_v63 = vadd.f32 %v723_v60, %v638_v41  ;;  %v1422_v8 = vunpack.i.l.bf16 %v1421_v46 }
  0xde   : > { %v738_v7 = vadd.f32 %v722_v1, %v637_v55  ;;  %v1416_v9 = vpop.permute.xlu1 %1415  ;;  %v797_v10 = vadd.f32 %v796_v43, %v795_v61  ;;  %v798_v52 = vsel %vm786_vm1, %v775_v2, 0.0  ;;  %v641_v15 = vadd.f32 %v625_v51, %v1695_v19  ;;  %v708_v26 = vpop.permute.xlu0 %707 }
  0xdf   : > { %v800_v13 = vsel %vm786_vm1, %v776_v3, 0.0  ;;  %v762_v16 = vadd.f32 %v1718_v36, %v739_v63  ;;  %v628_v17 = vmul.f32 %v1423_v4, %v1679_v62  ;;  %v1408_v18 = vunpack.i.h.bf16 %v1406_v57 }
  0xe0   : > { %v761_v54 = vadd.f32 %v1718_v36, %v738_v7  ;;  %v799_v21 = vadd.f32 %v798_v52, %v797_v10  ;;  %v1407_v12 = vunpack.i.l.bf16 %v1406_v57  ;;  %v1418_v55 = vunpack.i.h.bf16 %v1416_v9 }
  0xe1   : > { %v1417_v25 = vunpack.i.l.bf16 %v1416_v9  ;;  %v778_v28 = vmax.f32 %v762_v16, 0.0  ;;  %v627_v29 = vmul.f32 %v1422_v8, %v1679_v62  ;;  %v725_v30 = vmul.f32 %v1408_v18, %v1702_v22 }
  0xe2   : > { %v777_v27 = vmax.f32 %v761_v54, 0.0  ;;  %v801_v31 = vadd.f32 %v800_v13, %v799_v21  ;;  %v724_v19 = vmul.f32 %v1407_v12, %v1702_v22  ;;  %v727_v32 = vmul.f32 %v1418_v55, %v1702_v22  ;;  %v704_v33 = vpop.permute.xlu1 %703  ;;  %v785_v13 = vld [vmem:[#allocation2] sm:$0x1] }
  0xe3   : > { %v726_v5 = vmul.f32 %v1417_v25, %v1702_v22  ;;  %v741_v35 = vadd.f32 %v725_v30, %v640_v58  ;;  %v644_v23 = vadd.f32 %v628_v17, %v1707_v11  ;;  %v729_v37 = vmul.f32 %v1702_v22, %v708_v26 }
  0xe4   : > { %v802_v34 = vsel %vm786_vm1, %v777_v27, 0.0  ;;  %v740_v38 = vadd.f32 %v724_v19, %v639_v42  ;;  %v743_v39 = vadd.f32 %v727_v32, %v642_v6  ;;  %v643_v40 = vadd.f32 %v627_v29, %v1710_v20 }
  0xe5   : > { %v803_v24 = vadd.f32 %v802_v34, %v801_v31  ;;  %v742_v62 = vadd.f32 %v726_v5, %v641_v15  ;;  %v764_v41 = vadd.f32 %v1718_v36, %v741_v35  ;;  %v728_v44 = vmul.f32 %v1702_v22, %v704_v33 }
  0xe6   : > { %v804_v45 = vsel %vm786_vm1, %v778_v28, 0.0  ;;  %v763_v47 = vadd.f32 %v1718_v36, %v740_v38  ;;  %v745_v11 = vadd.f32 %v729_v37, %v644_v23  ;;  %v766_v42 = vadd.f32 %v1718_v36, %v743_v39 }
  0xe7   : > { %v765_v48 = vadd.f32 %v1718_v36, %v742_v62  ;;  %v805_v49 = vadd.f32 %v804_v45, %v803_v24  ;;  %v744_v50 = vadd.f32 %v728_v44, %v643_v40  ;;  %v780_v56 = vmax.f32 %v764_v41, 0.0 }
  0xe8   : > { %v779_v53 = vmax.f32 %v763_v47, 0.0  ;;  %v782_v58 = vmax.f32 %v766_v42, 0.0  ;;  %v768_v59 = vadd.f32 %v1718_v36, %v745_v11 }
  0xe9   : > { %v781_v46 = vmax.f32 %v765_v48, 0.0  ;;  %v767_v20 = vadd.f32 %v1718_v36, %v744_v50  ;;  %v808_v22 = vsel %vm786_vm1, %v780_v56, 0.0 }
  0xea   : > { %v806_v57 = vsel %vm786_vm1, %v779_v53, 0.0  ;;  %v812_v1 = vsel %vm786_vm1, %v782_v58, 0.0  ;;  %v784_v61 = vmax.f32 %v768_v59, 0.0 }
  0xeb   : > { %v807_v43 = vadd.f32 %v806_v57, %v805_v49  ;;  %v810_v14 = vsel %vm786_vm1, %v781_v46, 0.0  ;;  %v783_v51 = vmax.f32 %v767_v20, 0.0 }
  0xec   : > { %v816_v6 = vsel %vm786_vm1, %v784_v61, 0.0 }
  0xed   : > { %v809_v0 = vadd.f32 %v808_v22, %v807_v43  ;;  %v814_v3 = vsel %vm786_vm1, %v783_v51, 0.0 }
  0xef   : > { %v811_v60 = vadd.f32 %v810_v14, %v809_v0 }
  0xf1   : > { %v813_v2 = vadd.f32 %v812_v1, %v811_v60 }
  0xf3   : > { %v815_v4 = vadd.f32 %v814_v3, %v813_v2 }
  0xf5   : > { %v817_v7 = vadd.f32 %v816_v6, %v815_v4 }
  0xf7   : > { %v818_v63 = vrot.slane %v817_v7, 4 }
  0xf9   : > { %v819_v8 = vadd.f32 %v818_v63, %v817_v7 }
  0xfb   : > { %v820_v9 = vrot.slane %v819_v8, 2 }
  0xfd   : > { %v821_v10 = vadd.f32 %v820_v9, %v819_v8 }
  0xff   : > { %v822_v52 = vrot.slane %v821_v10, 1 }
 0x101   : > { %v823_v36 = vadd.f32 %v822_v52, %v821_v10  ;;  %830 = sbr.rel (%p1095_p1) target bundleno = 664 (0x298), region = 56 }
 0x103   : > { %v824_v15 = vadd.f32 %v823_v36, %v785_v13 }
 0x105   : > { %826 = vst.msk [vmem:[#allocation2] sm:$0x1] %vm825_vm2, %v824_v15 }
 0x106   : > { %v836_v54 = vld [vmem:[%s1882_s3 + $0x18] sm:$0xff]  ;;  %v1524_v16 = vmov 0.0   ;;  %v835_v17 = vld [vmem:[%s1882_s3 + $0x10] sm:$0xff]  ;;  %vm1525_vm3 = vmmov 0   ;;  %v834_v55 = vld [vmem:[%s1882_s3 + $0x8] sm:$0xff]  ;;  %vm921_vm4 = vcmask 523264  }
 0x107   : > { %1154 = vmatprep.subr.mxu0 %v1524_v16  ;;  %1162 = vmatprep.mubr.msk.f32.mxu0 %vm1525_vm3, %v1524_v16  ;;  %v919_v18 = vld [vmem:[%s1884_s5 + $0x38] sm:$0xff]  ;;  %v918_v12 = vld [vmem:[%s1884_s5 + $0x30] sm:$0xff]  ;;  %v917_v25 = vld [vmem:[%s1884_s5 + $0x28] sm:$0xff] }
 0x108   : > { %1155 = vmatpush3.msra.mxu0 %v836_v54  ;;  %1165 = vmatprep.subr.mxu1 %v1524_v16  ;;  %v833_v26 = vld [vmem:[%s1882_s3] sm:$0xff]  ;;  %v915_v29 = vld [vmem:[%s1884_s5 + $0x18] sm:$0xff]  ;;  %v914_v30 = vld [vmem:[%s1884_s5 + $0x10] sm:$0xff] }
 0x109   : > { %1156 = vmatprep.subr.mxu0 %v1524_v16  ;;  %1166 = vmatpush3.msra.mxu1 %v919_v18  ;;  %v916_v28 = vld [vmem:[%s1884_s5 + $0x20] sm:$0xff]  ;;  %v913_v31 = vld [vmem:[%s1884_s5 + $0x8] sm:$0xff] }
 0x10a   : > { %1157 = vmatpush3.msra.mxu0 %v835_v17  ;;  %1167 = vmatprep.subr.mxu1 %v1524_v16  ;;  %v912_v19 = vld [vmem:[%s1884_s5] sm:$0xff] }
 0x10b   : > { %1158 = vmatprep.subr.mxu0 %v1524_v16  ;;  %1168 = vmatpush3.msra.mxu1 %v918_v12  ;;  %v837_v32 = vld [vmem:[%s1883_s4] sm:$0x1] }
 0x10c   : > { %v831_v21 = vld [vmem:[#allocation2] sm:$0x1]  ;;  %1159 = vmatpush3.msra.mxu0 %v834_v55  ;;  %1169 = vmatprep.subr.mxu1 %v1524_v16 }
 0x10d   : > { %v832_v27 = vmul.f32 0.00390625, %v831_v21  ;;  %1160 = vmatprep.subr.mxu0 %v1524_v16  ;;  %1170 = vmatpush3.msra.mxu1 %v917_v25  ;;  %v920_v23 = vld [vmem:[%s1885_s6] sm:$0x1] }
 0x10e   : > { %1161 = vmatpush3.msra.mxu0 %v833_v26  ;;  %1171 = vmatprep.subr.mxu1 %v1524_v16 }
 0x10f   : > { %1163 = vmatmul.mubr.msk.f32.vlgmr.msra.gmra.mxu0 %vm786_vm1, %v832_v27  ;;  %1172 = vmatpush3.msra.mxu1 %v916_v28 }
 0x110   : > { %1173 = vmatprep.subr.mxu1 %v1524_v16  ;;  %1181 = vmatprep.mubr.msk.f32.mxu1 %vm1525_vm3, %v1524_v16 }
 0x111   : > { %1174 = vmatpush3.msra.mxu1 %v915_v29 }
 0x112   : > { %1175 = vmatprep.subr.mxu1 %v1524_v16 }
 0x113   : > { %1176 = vmatpush3.msra.mxu1 %v914_v30 }
 0x114   : > { %1177 = vmatprep.subr.mxu1 %v1524_v16 }
 0x115   : > { %1178 = vmatpush3.msra.mxu1 %v913_v31 }
 0x116   : > { %1179 = vmatprep.subr.mxu1 %v1524_v16 }
 0x117   : > { %1180 = vmatpush3.msra.mxu1 %v912_v19 }
 0x1cf   : > { %v907_v5 = vpop.f32.mrf.mxu0 }
 0x1d0   : > { %v908_v33 = vadd.f32 %v907_v5, %v837_v32 }
 0x1d1   : > { %v1164_v34 = vpop.f32.mrf.mxu0 }
 0x1d2   : > { %v911_v35 = vmax.f32 %v908_v33, 0.0 }
 0x1d4   : > { %1182 = vmatmul.mubr.msk.f32.vlgmr.msra.gmra.mxu1 %vm921_vm4, %v911_v35 }
 0x294   : > { %v991_v37 = vpop.f32.mrf.mxu1 }
 0x295   : > { %v992_v24 = vadd.f32 %v991_v37, %v920_v23 }
 0x296   : > { %v1183_v38 = vpop.f32.mrf.mxu1 }
 0x297   : > { %995 = vst [vmem:[%s1647_s16] sm:$0x1] %v992_v24 }
 0x298 PF: > { %s1098_s22 = sshll.u32 %s1505_s28, 4  ;;  %s1009_s15 = sshll.u32 %s1647_s16, 4  ;;  %s1010_s15 = int_to_ptr.vmem [resolvable:$true] %s1009_s15 }
 0x299   : > { %s1007_s10 = scalar_lea.hbm %s1886_s7, %s1098_s22  ;;  %s997_s27 = scalar_lea.sflag [#allocation4], %s292_s18 }
 0x29a   : > { %s1425_s19 = scalar_lea.vmem %s1010_s15, 16  ;;  %s1526_s20 = smov [#allocation3]  }
 0x29b   : > { %p1426_p2 = scmp.ne.s32.totalorder %s1010_s15, %s1425_s19  ;;  %s1429_s21 = sshll.u32 %s1526_s20, 4  ;;  %s1430_s21 = int_to_ptr.vmem [resolvable:$false] %s1429_s21 }
 0x29c   : > { %s1431_s0 = scalar_lea.vmem %s1430_s21, 32  ;;  %p1432_p6 = scmp.lt.s32.totalorder %s1010_s15, %s1430_s21 }
 0x29d   : > { %p1427_p4 = pnand %p1426_p2, %p1616_p3  ;;  %p1433_p7 = scmp.lt.s32.totalorder %s1431_s0, %s1425_s19 }
 0x29f   : > { %p1428_p5 = pneg %p1427_p4  ;;  %p1434_p8 = por %p1433_p7, %p1432_p6 }
 0x2a1   : > { %p1435_p10 = pnand %p1434_p8, %p1428_p5 }
 0x2a3   : > { %1438 = shalt.err (!%p1435_p10)
}
 0x2a4   : > { %s1439_s28 = scalar_lea.hbm %s1007_s10, 16  ;;  %s1443_s22 = scalar_lea.hbm %s1886_s7, 32 }
 0x2a5   : > { %p1440_p11 = scmp.ne.s32.totalorder %s1007_s10, %s1439_s28  ;;  %p1444_p0 = scmp.lt.s32.totalorder %s1007_s10, %s1886_s7 }
 0x2a6   : > { %p1445_p1 = scmp.lt.s32.totalorder %s1443_s22, %s1439_s28 }
 0x2a7   : > { %p1441_p12 = pnand %p1440_p11, %p1616_p3 }
 0x2a8   : > { %p1446_p2 = por %p1445_p1, %p1444_p0 }
 0x2a9   : > { %p1442_p13 = pneg %p1441_p12 }
 0x2ab   : > { %p1447_p4 = pnand %p1446_p2, %p1442_p13 }
 0x2ad   : > { %1450 = shalt.err (!%p1447_p4)
}
 0x2ae   : > { %1184 = dma.vmem_to_hbm [thread:$0]  (%p1616_p3), %s1010_s15, 16, %s1007_s10, %s997_s27  }
 0x2af PF: > { %p1190_p5 = scmp.ge.s32.totalorder %s1517_s8, 2  ;;  %s1021_s0 = sand.u32 1, %s1489_s24  }
 0x2b0   : > { %s1022_s19 = scalar_lea.sflag [#allocation4], %s1021_s0 }
 0x2b1   : > { %p1187_p6 = pnand %p1190_p5, %p1626_p9 }
 0x2b3   : > { %p1188_p7 = pneg %p1187_p6 }
 0x2b5   : > { %1484 = dma.done.wait (%p1188_p7), %s1022_s19, 16  }
 0x2b6   : > { %1486 = vsyncadd (%p1188_p7), %s1022_s19, 4294967280  ;;  %s20_s8 = sadd.s32 1, %s1517_s8   ;;  %s1891_s24 = smov %s1493_s25 }
 0x2b7   : > { %p17_p8 = scmp.ge.s32.totalorder %s20_s8, 6   ;;  %s1892_s25 = smov %s1497_s26 }
 0x2b8   : > { %s1893_s26 = smov %s1634_s17  ;;  %s1894_s27 = smov %s1509_s29 }
 0x2b9   : > { %s1895_s28 = smov %s1513_s30  ;;  %s1896_s29 = smov %s1899_s11 }
 0x2ba   : > { %s1897_s30 = smov %s1903_s12  ;;  %19 = sbr.rel (!%p17_p8) target bundleno = 7 (0x7), region = 91 }
 0x2bf   :  { %1026 = vsyncpa [#allocation4], 1 }
 0x2c0   :  { %1028 = vsyncpa [#allocation4 + $0x1], 1 }

</bundles_post_ra>
